<compile_context>
chip_gen: v5e
topology: v5e:2x2
jax: 0.10.0
libtpu: 0.0.40
codegen_flags: <defaults>
</compile_context>

<pallas_src>
import functools

import jax
import jax.numpy as jnp
from jax.experimental import pallas as pl
from jax.experimental.pallas import tpu as pltpu

LANE = 128  # TPU lane width; hidden feature dims are zero-padded to multiples of this


def _round_up(x, m):
    return (x + m - 1) // m * m


# ----------------------------- Pallas kernel --------------------------------
def _fused_dnn_kernel(x_ref, *refs, num_hidden, compute_dtype):
    """One batch tile of the whole MLP, all weights resident in VMEM.

    refs = (w_1, shift_1, ..., w_H, shift_H, w_out_row, o_ref)
      x_ref     : (TB, D0)       input tile, native dtype, unpadded features
      w_i       : (Kin_i, Dip)   bf16 hidden weight (BN scale folded); Kin_1 = D0
      shift_i   : (1, Dip)       f32 fused Linear-bias + BN shift
      w_out_row : (1, DHp)       f32 output weight as a row vector (padded lanes = 0)
      o_ref     : (TB, 1)        f32 output column
    """
    o_ref = refs[-1]
    wo_ref = refs[-2]

    # Cast once in-kernel (VPU) instead of materializing a cast/pad pass in HBM.
    h = x_ref[...].astype(compute_dtype)
    for i in range(num_hidden):
        w_ref = refs[2 * i]
        s_ref = refs[2 * i + 1]
        z = jnp.dot(h, w_ref[...], preferred_element_type=jnp.float32)  # MXU, f32 acc
        # bias-add + ReLU in f32 (v5e VPU has no bf16 path); single cast back to bf16.
        h = jnp.maximum(z + s_ref[...], 0.0).astype(compute_dtype)

    # Final 1-unit projection: elementwise multiply + lane reduce (avoids N=1 MXU
    # matmul).  Padded lanes of both h and w_out are zero, so they contribute 0.
    y = jnp.sum(h.astype(jnp.float32) * wo_ref[...], axis=-1, keepdims=True)
    o_ref[...] = y.astype(o_ref.dtype)


# ----------------------------- Parameter setup ------------------------------
def init_dnn_params(key, input_dim, mlp_dims, use_bn, *, weight_dtype=jnp.bfloat16):
    """Matches the PyTorch module (eval mode):
       Linear.weight ~ N(0, 0.01), Linear.bias = 0,
       BatchNorm1d: gamma=1, beta=0, running_mean=0, running_var=1, eps=1e-5.

    BN + bias fold (exact in eval mode):
       s = gamma / sqrt(var + eps)
       y = relu( x @ (W^T * s) + (s * (b - mean) + beta) )

    Weights stored transposed (in, out).  The first layer's K dim is kept at the
    true input_dim (so x needs no feature padding); later K dims / all output dims
    are zero-padded to 128-lane multiples.  Hidden weights are cast to bf16."""
    dims = [input_dim] + list(mlp_dims)
    eps = 1e-5
    ws, shifts = [], []
    for i in range(len(mlp_dims)):
        key, wk = jax.random.split(key)
        w = 0.01 * jax.random.normal(wk, (dims[i], dims[i + 1]), dtype=jnp.float32)
        b = jnp.zeros((dims[i + 1],), jnp.float32)
        if use_bn:
            gamma = jnp.ones((dims[i + 1],), jnp.float32)
            beta = jnp.zeros((dims[i + 1],), jnp.float32)
            mean = jnp.zeros((dims[i + 1],), jnp.float32)
            var = jnp.ones((dims[i + 1],), jnp.float32)
            s = gamma / jnp.sqrt(var + eps)
            w = w * s[None, :]                       # fold BN scale into the weight
            shift = s * (b - mean) + beta
        else:
            shift = b
        kin = dims[i] if i == 0 else _round_up(dims[i], LANE)   # first layer: unpadded K
        dout_p = _round_up(dims[i + 1], LANE)
        wp = jnp.zeros((kin, dout_p), jnp.float32).at[: dims[i], : dims[i + 1]].set(w)
        sp = jnp.zeros((1, dout_p), jnp.float32).at[0, : dims[i + 1]].set(shift)
        ws.append(wp.astype(weight_dtype))
        shifts.append(sp)

    key, wk = jax.random.split(key)
    w_out = 0.01 * jax.random.normal(wk, (dims[-1], 1), dtype=jnp.float32)
    dlast_p = _round_up(dims[-1], LANE)
    w_out_row = jnp.zeros((1, dlast_p), jnp.float32).at[0, : dims[-1]].set(w_out[:, 0])

    return {
        "ws": ws,
        "shifts": shifts,
        "w_out_row": w_out_row,       # kept f32: tiny, used on VPU/XLU only
        "input_dim": input_dim,
    }


# ----------------------------- VMEM budget -----------------------------------
def _vmem_limit_bytes():
    """Half of physical VMEM: ~64 MiB on v5e/v6e (128 MiB parts), 32 MiB on v7x."""
    try:
        cap = getattr(pltpu.get_tpu_info(), "vmem_capacity_bytes", None)
    except Exception:
        cap = None
    if not cap:
        return 32 * 1024 * 1024
    return min(cap // 2, 96 * 1024 * 1024)


# ----------------------------- Forward pass ----------------------------------
def dnn_forward(x, params, *, batch_tile=512):
    """x: (..., input_dim) -> (..., 1), single fused pallas_call.

    No wrapper-side pad/cast: x is handed to the kernel unpadded in its native
    dtype; the last (partial) batch tile reads past the array (rows dropped on
    write-back), so no batch padding pass is materialized in HBM either."""
    d0 = params["input_dim"]
    lead = x.shape[:-1]
    xb = x.reshape((-1, d0))
    batch = xb.shape[0]

    # Batch tile: multiple of 8 sublanes (or == full batch when batch < 8).
    batch_tile = max(8, _round_up(batch_tile, 8))
    if batch <= 8:
        tb = batch                                  # block == full dim: always legal
    else:
        tb = min(batch_tile, (batch // 8) * 8)
        if batch >= 16:
            # Guarantee >= 2 grid steps so the "parallel" axis feeds both v7x TCs.
            tb = min(tb, _round_up((batch + 1) // 2, 8))
    grid = pl.cdiv(batch, tb)                       # last tile may be partial

    num_hidden = len(params["ws"])
    kernel = functools.partial(
        _fused_dnn_kernel,
        num_hidden=num_hidden,
        compute_dtype=params["ws"][0].dtype,
    )

    in_specs = [pl.BlockSpec((tb, d0), lambda i: (i, 0))]       # batch-tiled, unpadded
    operands = [xb]
    for w, s in zip(params["ws"], params["shifts"]):
        in_specs.append(pl.BlockSpec(w.shape, lambda i: (0, 0)))   # VMEM-resident
        in_specs.append(pl.BlockSpec(s.shape, lambda i: (0, 0)))
        operands += [w, s]
    in_specs.append(pl.BlockSpec(params["w_out_row"].shape, lambda i: (0, 0)))
    operands.append(params["w_out_row"])
    # NOTE: weights are double-buffered by default; at these sizes (<200 KiB total)
    # that is negligible.  If mlp_dims grow to 1-4K, add pipeline_mode=pl.Buffered(1)
    # to the constant-index weight specs to halve their VMEM footprint on v7x.

    out = pl.pallas_call(
        kernel,
        out_shape=jax.ShapeDtypeStruct((batch, 1), jnp.float32),   # 4 B/sample written
        grid=(grid,),
        in_specs=in_specs,
        out_specs=pl.BlockSpec((tb, 1), lambda i: (i, 0)),
        compiler_params=pltpu.CompilerParams(
            dimension_semantics=("parallel",),      # shards batch across TCs (v7x)
            vmem_limit_bytes=_vmem_limit_bytes(),
        ),
    )(*operands)

    return out.reshape(lead + (1,))


def dnn_forward_ref(x, params):
    """Pure-JAX reference with identical numerics (same bf16 casts / padding)."""
    d0 = params["input_dim"]
    wdtype = params["ws"][0].dtype
    h = x.reshape((-1, d0)).astype(wdtype)
    for w, s in zip(params["ws"], params["shifts"]):
        z = jnp.dot(h, w, preferred_element_type=jnp.float32)
        h = jnp.maximum(z + s, 0.0).astype(wdtype)
    y = jnp.sum(h.astype(jnp.float32) * params["w_out_row"], axis=-1, keepdims=True)
    return y.reshape(x.shape[:-1] + (1,))


# ----------------------------- Main ------------------------------------------
if __name__ == "__main__":
    batch = 8
    input_dim = 32
    mlp_dims = [64, 32]
    use_bn = True  # BN in eval mode (running stats), folded into weights/shift

    key = jax.random.PRNGKey(0)
    key, pkey, xkey = jax.random.split(key, 3)

    params = init_dnn_params(pkey, input_dim, mlp_dims, use_bn)
    x = jax.random.normal(xkey, (batch, input_dim), dtype=jnp.float32)

    y = jax.block_until_ready(dnn_forward(x, params))
    y_ref = dnn_forward_ref(x, params)

    assert y.shape == (batch, 1), y.shape
    assert jnp.allclose(y, y_ref, atol=1e-5, rtol=1e-3), float(
        jnp.max(jnp.abs(y - y_ref)))

    print("KERNEL_OK")
</pallas_src>

<mosaic_0001>
module attributes {stable_mosaic.version = 11 : i64} {
  func.func @_fused_dnn_kernel(%arg0: i32, %arg1: memref<8x32xf32, #tpu.memory_space<vmem>>, %arg2: memref<32x128xbf16, #tpu.memory_space<vmem>>, %arg3: memref<1x128xf32, #tpu.memory_space<vmem>>, %arg4: memref<128x128xbf16, #tpu.memory_space<vmem>>, %arg5: memref<1x128xf32, #tpu.memory_space<vmem>>, %arg6: memref<1x128xf32, #tpu.memory_space<vmem>>, %arg7: memref<8x1xf32, #tpu.memory_space<vmem>>) attributes {dimension_semantics = [#tpu.dimension_semantics<parallel>], iteration_bounds = array<i64: 1>, scalar_prefetch = 0 : i64, scratch_operands = 0 : i64, tpu.core_type = #tpu.core_type<tc>, window_params = [{transform_indices = @transform_0, window_bounds = array<i64: 8, 32>}, {pipeline_mode = #tpu.pipeline_mode<synchronous>, transform_indices = @transform_1, window_bounds = array<i64: 32, 128>}, {pipeline_mode = #tpu.pipeline_mode<synchronous>, transform_indices = @transform_2, window_bounds = array<i64: 1, 128>}, {pipeline_mode = #tpu.pipeline_mode<synchronous>, transform_indices = @transform_3, window_bounds = array<i64: 128, 128>}, {pipeline_mode = #tpu.pipeline_mode<synchronous>, transform_indices = @transform_4, window_bounds = array<i64: 1, 128>}, {pipeline_mode = #tpu.pipeline_mode<synchronous>, transform_indices = @transform_5, window_bounds = array<i64: 1, 128>}, {transform_indices = @transform_6, window_bounds = array<i64: 8, 1>}]} {
    %c0 = arith.constant 0 : index
    %c0_0 = arith.constant 0 : index
    %0 = vector.load %arg1[%c0, %c0_0] : memref<8x32xf32, #tpu.memory_space<vmem>>, vector<8x32xf32>
    %1 = arith.truncf %0 : vector<8x32xf32> to vector<8x32xbf16>
    %c0_1 = arith.constant 0 : index
    %c0_2 = arith.constant 0 : index
    %2 = vector.load %arg2[%c0_1, %c0_2] : memref<32x128xbf16, #tpu.memory_space<vmem>>, vector<32x128xbf16>
    %cst = arith.constant dense<0.000000e+00> : vector<8x128xf32>
    %3 = tpu.matmul %1, %2, %cst {dimension_numbers = #tpu.dot_dimension_numbers<[1], [0], [0], [1], [0, 0, 1, 1], [], []>} : vector<8x32xbf16>, vector<32x128xbf16>, vector<8x128xf32> -> vector<8x128xf32>
    %c0_3 = arith.constant 0 : index
    %c0_4 = arith.constant 0 : index
    %4 = vector.load %arg3[%c0_3, %c0_4] : memref<1x128xf32, #tpu.memory_space<vmem>>, vector<1x128xf32>
    %5 = vector.broadcast %4 : vector<1x128xf32> to vector<8x128xf32>
    %6 = arith.addf %3, %5 : vector<8x128xf32>
    %cst_5 = arith.constant 0.000000e+00 : f32
    %7 = vector.broadcast %cst_5 : f32 to vector<8x128xf32>
    %8 = arith.maximumf %6, %7 : vector<8x128xf32>
    %9 = arith.truncf %8 : vector<8x128xf32> to vector<8x128xbf16>
    %c0_6 = arith.constant 0 : index
    %c0_7 = arith.constant 0 : index
    %10 = vector.load %arg4[%c0_6, %c0_7] : memref<128x128xbf16, #tpu.memory_space<vmem>>, vector<128x128xbf16>
    %cst_8 = arith.constant dense<0.000000e+00> : vector<8x128xf32>
    %11 = tpu.matmul %9, %10, %cst_8 {dimension_numbers = #tpu.dot_dimension_numbers<[1], [0], [0], [1], [0, 0, 1, 1], [], []>} : vector<8x128xbf16>, vector<128x128xbf16>, vector<8x128xf32> -> vector<8x128xf32>
    %c0_9 = arith.constant 0 : index
    %c0_10 = arith.constant 0 : index
    %12 = vector.load %arg5[%c0_9, %c0_10] : memref<1x128xf32, #tpu.memory_space<vmem>>, vector<1x128xf32>
    %13 = vector.broadcast %12 : vector<1x128xf32> to vector<8x128xf32>
    %14 = arith.addf %11, %13 : vector<8x128xf32>
    %cst_11 = arith.constant 0.000000e+00 : f32
    %15 = vector.broadcast %cst_11 : f32 to vector<8x128xf32>
    %16 = arith.maximumf %14, %15 : vector<8x128xf32>
    %17 = arith.truncf %16 : vector<8x128xf32> to vector<8x128xbf16>
    %18 = arith.extf %17 : vector<8x128xbf16> to vector<8x128xf32>
    %c0_12 = arith.constant 0 : index
    %c0_13 = arith.constant 0 : index
    %19 = vector.load %arg6[%c0_12, %c0_13] : memref<1x128xf32, #tpu.memory_space<vmem>>, vector<1x128xf32>
    %20 = vector.broadcast %19 : vector<1x128xf32> to vector<8x128xf32>
    %21 = arith.mulf %18, %20 : vector<8x128xf32>
    %cst_14 = arith.constant dense<0.000000e+00> : vector<8xf32>
    %22 = vector.multi_reduction <add>, %21, %cst_14 [1] : vector<8x128xf32> to vector<8xf32>
    %23 = vector.shape_cast %22 : vector<8xf32> to vector<8x1xf32>
    %c0_15 = arith.constant 0 : index
    %c0_16 = arith.constant 0 : index
    %24 = vector.load %arg7[%c0_15, %c0_16] : memref<8x1xf32, #tpu.memory_space<vmem>>, vector<8x1xf32>
    tpu.vector_store %arg7[%c0_15, %c0_16], %23 {strides = array<i32>} : memref<8x1xf32, #tpu.memory_space<vmem>>, vector<8x1xf32>,
    return
  }
  func.func @transform_0(%arg0: i32) -> (i32, i32) {
    %c0_i32 = arith.constant 0 : i32
    %c0_i32_0 = arith.constant 0 : i32
    return %arg0, %c0_i32 : i32, i32
  }
  func.func @transform_1(%arg0: i32) -> (i32, i32) {
    %c0_i32 = arith.constant 0 : i32
    %c0_i32_0 = arith.constant 0 : i32
    %c0_i32_1 = arith.constant 0 : i32
    return %c0_i32, %c0_i32_0 : i32, i32
  }
  func.func @transform_2(%arg0: i32) -> (i32, i32) {
    %c0_i32 = arith.constant 0 : i32
    %c0_i32_0 = arith.constant 0 : i32
    %c0_i32_1 = arith.constant 0 : i32
    return %c0_i32, %c0_i32_0 : i32, i32
  }
  func.func @transform_3(%arg0: i32) -> (i32, i32) {
    %c0_i32 = arith.constant 0 : i32
    %c0_i32_0 = arith.constant 0 : i32
    %c0_i32_1 = arith.constant 0 : i32
    return %c0_i32, %c0_i32_0 : i32, i32
  }
  func.func @transform_4(%arg0: i32) -> (i32, i32) {
    %c0_i32 = arith.constant 0 : i32
    %c0_i32_0 = arith.constant 0 : i32
    %c0_i32_1 = arith.constant 0 : i32
    return %c0_i32, %c0_i32_0 : i32, i32
  }
  func.func @transform_5(%arg0: i32) -> (i32, i32) {
    %c0_i32 = arith.constant 0 : i32
    %c0_i32_0 = arith.constant 0 : i32
    %c0_i32_1 = arith.constant 0 : i32
    return %c0_i32, %c0_i32_0 : i32, i32
  }
  func.func @transform_6(%arg0: i32) -> (i32, i32) {
    %c0_i32 = arith.constant 0 : i32
    %c0_i32_0 = arith.constant 0 : i32
    return %arg0, %c0_i32 : i32, i32
  }
}

</mosaic_0001>

<bundles_post_ra>
// kernel: tpu_custom_call.1
= control target key start
LH: loop header
LB: loop body
LE: loop exit
PB: predicated region body
PF: predicated region fallthrough
CT: control target
= control target key end

     0   :  { %11 = vsyncpa [#allocation3], 0  ;;  %s405_s0 = inlined_call_operand.hbm [shape: f32[8,32], index: 0, kind: input, shape index: {}]   ;;  %s406_s1 = inlined_call_operand.hbm [shape: bf16[32,128], index: 1, kind: input, shape index: {}]   ;;  %s407_s2 = inlined_call_operand.vmem [shape: f32[1,128], index: 2, kind: input, shape index: {}]   ;;  %s408_s3 = inlined_call_operand.hbm [shape: bf16[128,128], index: 3, kind: input, shape index: {}]   ;;  %s409_s4 = inlined_call_operand.vmem [shape: f32[1,128], index: 4, kind: input, shape index: {}]   ;;  %s410_s5 = inlined_call_operand.vmem [shape: f32[1,128], index: 5, kind: input, shape index: {}]   ;;  %s411_s6 = inlined_call_operand.vmem [shape: f32[8,1], index: 6, kind: output, shape index: {}]  }
   0x1   :  { %12 = vsyncpa [#allocation5], 0  ;;  %s28_s23 = sshll.u32 %s406_s1, 4  ;;  %s344_s24 = smov [#allocation4]   ;;  %s29_s23 = int_to_ptr.hbm [resolvable:$true] %s28_s23 }
   0x2   :  { %s30_s25 = sshll.u32 %s344_s24, 4  ;;  %s18_s28 = sshll.u32 %s405_s0, 4  ;;  %s31_s25 = int_to_ptr.vmem [resolvable:$true] %s30_s25  ;;  %s19_s28 = int_to_ptr.hbm [resolvable:$true] %s18_s28 }
   0x3   :  { %s345_s29 = smov 64   ;;  %s346_s30 = smov 4  }
   0x4   :  { %36 = dma.hbm_to_vmem [thread:$0]  %s29_s23, 256, %s31_s25, [#allocation5], %s345_s29, %s345_s29, %s346_s30  }
   0x5   :  { %s347_s7 = smov [#allocation2]   ;;  %s43_s11 = sshll.u32 %s408_s3, 4  ;;  %s44_s11 = int_to_ptr.hbm [resolvable:$true] %s43_s11 }
   0x6   :  { %s20_s8 = sshll.u32 %s347_s7, 4  ;;  %s348_s1 = smov [#allocation6]   ;;  %s21_s8 = int_to_ptr.vmem [resolvable:$true] %s20_s8 }
   0x7   :  { %23 = dma.hbm_to_vmem [thread:$0]  %s19_s28, 128, %s21_s8, [#allocation3]  }
   0x8   :  { %s45_s12 = sshll.u32 %s348_s1, 4  ;;  %s46_s12 = int_to_ptr.vmem [resolvable:$true] %s45_s12 }
   0x9   :  { %51 = dma.hbm_to_vmem [thread:$0]  %s44_s11, 1024, %s46_s12, [#allocation5], %s345_s29, %s345_s29, %s346_s30  }
   0xa   :  { %340 = dma.done.wait [#allocation3], 128  }
   0xb   :  { %341 = vsyncadd [#allocation3], 4294967168 }
   0xc   :  { %342 = dma.done.wait [#allocation5], 1280  }
   0xd   :  { %343 = vsyncadd [#allocation5], 4294966016  ;;  %v251_v0 = vld [vmem:[#allocation4 + $0x8] sm:$0xff]  ;;  %v250_v2 = vld [vmem:[#allocation4] sm:$0xff]  ;;  %vm91_vm0 = vcmask 261120   ;;  %vm201_vm1 = vcmask 7168  }
   0xe   :  { %v259_v1 = vld [vmem:[#allocation6 + $0x38] sm:$0xff]  ;;  %101 = vmatpush.bf16.msra.mxu0 %v251_v0  ;;  %v69_v3 = vld [vmem:[#allocation2] sm:$0xff]  ;;  %v258_v4 = vld [vmem:[#allocation6 + $0x30] sm:$0xff] }
   0xf   :  { %178 = vmatpush.bf16.msra.mxu1 %v259_v1  ;;  %v70_v5 = vpack.c.bf16 %v69_v3, %v69_v3  ;;  %v257_v6 = vld [vmem:[#allocation6 + $0x28] sm:$0xff]  ;;  %v256_v7 = vld [vmem:[#allocation6 + $0x20] sm:$0xff]  ;;  %v255_v8 = vld [vmem:[#allocation6 + $0x18] sm:$0xff] }
  0x10   :  { %v254_v9 = vld [vmem:[#allocation6 + $0x10] sm:$0xff]  ;;  %v253_v10 = vld [vmem:[#allocation6 + $0x8] sm:$0xff]  ;;  %v252_v11 = vld [vmem:[#allocation6] sm:$0xff] }
  0x11   :  { %v265_v12 = vld [vmem:[%s407_s2] ss:$0 sm:$0xff] }
  0x12   :  { %102 = vmatpush.bf16.msra.mxu0 %v250_v2  ;;  %v266_v18 = vld [vmem:[%s409_s4] ss:$0 sm:$0xff] }
  0x13   :  { %179 = vmatpush.bf16.msra.mxu1 %v258_v4  ;;  %v267_v23 = vld [vmem:[%s410_s5] ss:$0 sm:$0xff] }
  0x15   :  { %217 = vmatmul.msk.bf16.vlgmr.msra.gmra.mxu0 %vm91_vm0, %v70_v5 }
  0x17   :  { %180 = vmatpush.bf16.msra.mxu1 %v257_v6 }
  0x1b   :  { %181 = vmatpush.bf16.msra.mxu1 %v256_v7 }
  0x1f   :  { %182 = vmatpush.bf16.msra.mxu1 %v255_v8 }
  0x23   :  { %183 = vmatpush.bf16.msra.mxu1 %v254_v9 }
  0x27   :  { %184 = vmatpush.bf16.msra.mxu1 %v253_v10 }
  0x2b   :  { %185 = vmatpush.bf16.msra.mxu1 %v252_v11 }
  0x92   :  { %v104_v13 = vpop.f32.mrf.mxu0 }
  0x93   :  { %v105_v14 = vadd.f32 %v265_v12, %v104_v13 }
  0x95   :  { %v108_v15 = vmax.f32 %v105_v14, 0.0 }
  0x97   :  { %v109_v16 = vpack.c.bf16 %v108_v15, %v108_v15 }
  0x99   :  { %186 = vmatmul.bf16.vlgmr.msra.gmra.mxu1 %v109_v16 }
  0x9a   :  { %v106_v17 = vpop.f32.mrf.mxu0 }
 0x116   :  { %v187_v19 = vpop.f32.mrf.mxu1 }
 0x117   :  { %v188_v20 = vadd.f32 %v266_v18, %v187_v19 }
 0x119   :  { %v191_v21 = vmax.f32 %v188_v20, 0.0 }
 0x11b   :  { %v192_v22 = vpack.c.bf16 %v191_v21, %v191_v21 }
 0x11d   :  { %v193_v24 = vunpack.c.l.bf16 %v192_v22 }
 0x11e   :  { %v189_v25 = vpop.f32.mrf.mxu1 }
 0x11f   :  { %v198_v26 = vmul.f32 %v267_v23, %v193_v24 }
 0x121   :  { %199 = vadd.xlane.f32.xlu0 %v198_v26 }
 0x194   :  { %v200_v27 = vpop.xlane.xlu0 %199 }
 0x195   :  { %202 = vst.msk [vmem:[%s411_s6] sm:$0xff] %vm201_vm1, %v200_v27 }
 0x196   :  { %207 = vsyncpa [#allocation3], 1 }
 0x197   :  { %208 = vsyncpa [#allocation5], 1 }

</bundles_post_ra>
